<compile_context>
chip_gen: v7x
topology: tpu7x:2x2x1
jax: 0.10.0
libtpu: 0.0.40
codegen_flags: <defaults>
</compile_context>

<pallas_src>
import math

import jax
import jax.numpy as jnp
from jax import lax
from jax.experimental import pallas as pl
from jax.experimental.pallas import tpu as pltpu

LOG_STD_MAX = 2.0
LOG_STD_MIN = -20.0
N_ACT = 5            # action dimension (mu_layer / log_std_layer out_features)
FEAT = 128           # base_encoder out_dim
HID = 256            # hidden width of the synthetic encoder MLP
HEAD_W = 128         # lane-aligned per-head width (mu -> lanes 0..127, log_std -> 128..255)
OUT_W = 128          # packed output width: tanh(pi) lanes 0..N_ACT-1, logp lane N_ACT

_LOG_2 = math.log(2.0)
_HALF_LOG_2PI = 0.5 * math.log(2.0 * math.pi)


def _softplus(z):
    # numerically-stable softplus; lowers to VPU compares + EUP exp/log
    return jnp.maximum(z, 0.0) + jnp.log1p(jnp.exp(-jnp.abs(z)))


def actor_kernel(x_ref, noise_ref,
                 w1_ref, b1_ref, w2_ref, b2_ref, wh_ref, bh_ref,
                 out_ref):
    # --- base_encoder: flatten -> Linear -> ReLU -> Linear -> ReLU -> 128 feats
    # bf16 MXU operands, f32 accumulation; elementwise math in f32.
    x = x_ref[...]                                                   # bf16 [TM, Din]
    h1 = jnp.dot(x, w1_ref[...],
                 preferred_element_type=jnp.float32) + b1_ref[...]   # f32 [TM, HID]
    h1 = jnp.maximum(h1, 0.0)
    h2 = jnp.dot(h1.astype(jnp.bfloat16), w2_ref[...],
                 preferred_element_type=jnp.float32) + b2_ref[...]   # f32 [TM, FEAT]
    net_out = jnp.maximum(h2, 0.0)

    # --- fused, lane-aligned mu / log_std head: one [FEAT, 256] matmul.
    # Columns 0..N_ACT-1 hold mu weights, 128..128+N_ACT-1 hold log_std
    # weights, everything else is exactly zero -> full-vreg slices below.
    head = jnp.dot(net_out.astype(jnp.bfloat16), wh_ref[...],
                   preferred_element_type=jnp.float32) + bh_ref[...]  # [TM, 256]
    mu = head[:, :HEAD_W]                                             # [TM, 128]
    log_std = jnp.clip(head[:, HEAD_W:], LOG_STD_MIN, LOG_STD_MAX)    # [TM, 128]
    std = jnp.exp(log_std)

    # reparameterized sample (deterministic=False path): pi = mu + std * eps.
    # eps is lane-dense [TM, 128]; lanes >= N_ACT are zero, so pi is exactly 0
    # there (mu = 0, std * 0 = 0) and tanh(pi) stays 0 in the padding lanes.
    eps = noise_ref[...]
    pi = mu + std * eps

    lane = lax.broadcasted_iota(jnp.int32, pi.shape, 1)               # [TM, 128]
    act_mask = lane < N_ACT

    # Normal(mu, std).log_prob(pi).sum(-1); (pi - mu)/std == eps exactly, so
    # the divide/subtract are elided.  tanh-squash correction:
    #   - sum 2*(log 2 - pi - softplus(-2*pi))
    gauss = -0.5 * eps * eps - log_std - _HALF_LOG_2PI
    corr = 2.0 * (_LOG_2 - pi - _softplus(-2.0 * pi))
    per_lane = jnp.where(act_mask, gauss - corr, 0.0)                 # mask pad lanes
    logp = jnp.sum(per_lane, axis=-1, keepdims=True)                  # [TM, 1]

    tanh_pi = jnp.tanh(pi)

    # Single lane-dense (TM, 128) store: tanh(pi) in lanes 0..N_ACT-1, logp in
    # lane N_ACT, zeros elsewhere.  Assembled with a lane-mask select instead
    # of a narrow concatenate (no masked vst / XLU merges).
    out_ref[...] = jnp.where(lane == N_ACT, logp, tanh_pi)


def _round_up(x, m):
    return ((x + m - 1) // m) * m


def prepare_actor_params(params):
    """One-time parameter packing: call once at init, NOT per forward.

    Pre-casts the encoder weights to bf16 and builds the fused, lane-aligned
    mu/log_std head so the per-call forward does zero weight preprocessing.
    """
    w1, b1, w2, b2, wmu, bmu, wls, bls = params

    wh = jnp.zeros((FEAT, 2 * HEAD_W), jnp.float32)
    wh = wh.at[:, :N_ACT].set(wmu)
    wh = wh.at[:, HEAD_W:HEAD_W + N_ACT].set(wls)
    bh = jnp.zeros((1, 2 * HEAD_W), jnp.float32)
    bh = bh.at[:, :N_ACT].set(bmu.reshape(1, N_ACT))
    bh = bh.at[:, HEAD_W:HEAD_W + N_ACT].set(bls.reshape(1, N_ACT))

    return (w1.astype(jnp.bfloat16),
            b1.astype(jnp.float32).reshape(1, HID),
            w2.astype(jnp.bfloat16),
            b2.astype(jnp.float32).reshape(1, FEAT),
            wh.astype(jnp.bfloat16),
            bh)


@jax.jit
def actor_forward(obs, noise, prepared):
    """obs: [B, C, H, W] float32; noise: [B, N_ACT] standard normal.

    `prepared` = prepare_actor_params(params) (built once).  Returns
    (pi_action [B, N_ACT], logp_pi [B]) matching the PyTorch forward with
    deterministic=False, with_logprob=True.
    """
    w1b, b1f, w2b, b2f, whb, bhf = prepared
    B = obs.shape[0]
    d_in = w1b.shape[0]

    # Batch tile: multiple of 16 (packed bf16 sublanes); at least 2 grid steps
    # once the padded batch reaches 32 so v7x's 2nd TensorCore participates;
    # capped at 256 rows so per-step compute dominates grid-step overhead.
    b16 = _round_up(B, 16)
    if b16 <= 16:
        tm = 16
    else:
        tm = min(256, _round_up(-(-b16 // 2), 16))
    b_pad = _round_up(b16, tm)

    # --- per-call glue (input-dependent only): flatten NCHW, pad, cast ---
    x = obs.reshape(B, -1).astype(jnp.float32)
    x = jnp.pad(x, ((0, b_pad - B), (0, 0))).astype(jnp.bfloat16)
    # noise padded to a lane-dense 128-wide buffer (zeros in lanes >= N_ACT)
    eps = jnp.pad(noise.astype(jnp.float32),
                  ((0, b_pad - B), (0, HEAD_W - N_ACT)))

    vmem = pltpu.MemorySpace.VMEM

    def batch_spec(n):      # tiled over the batch grid axis (double-buffered)
        return pl.BlockSpec((tm, n), lambda i: (i, 0), memory_space=vmem)

    def const_spec(shape):  # constant index_map -> DMA'd once, VMEM-resident
        return pl.BlockSpec(shape, lambda i: (0, 0), memory_space=vmem)

    flops = 2 * b_pad * (d_in * HID + HID * FEAT + FEAT * 2 * HEAD_W)
    bytes_accessed = (x.size * 2 + eps.size * 4 + b_pad * OUT_W * 4
                      + w1b.size * 2 + w2b.size * 2 + whb.size * 2
                      + b1f.size * 4 + b2f.size * 4 + bhf.size * 4)

    out = pl.pallas_call(
        actor_kernel,
        out_shape=jax.ShapeDtypeStruct((b_pad, OUT_W), jnp.float32),
        grid=(b_pad // tm,),
        in_specs=[
            batch_spec(d_in),                   # x tile (bf16)
            batch_spec(HEAD_W),                 # noise tile (f32, lane-dense)
            const_spec((d_in, HID)),            # w1 (bf16, resident)
            const_spec((1, HID)),               # b1 (f32)
            const_spec((HID, FEAT)),            # w2 (bf16, resident)
            const_spec((1, FEAT)),              # b2 (f32)
            const_spec((FEAT, 2 * HEAD_W)),     # fused lane-aligned head weight (bf16)
            const_spec((1, 2 * HEAD_W)),        # fused head bias (f32)
        ],
        out_specs=batch_spec(OUT_W),
        compiler_params=pltpu.CompilerParams(
            # batch axis is embarrassingly parallel -> v7x's 2 TCs split tiles
            dimension_semantics=("parallel",),
            vmem_limit_bytes=32 * 1024 * 1024,  # working set is <4 MiB; ample everywhere
        ),
        cost_estimate=pl.CostEstimate(
            flops=flops,
            transcendentals=4 * b_pad * HEAD_W,   # exp, softplus(exp+log), tanh
            bytes_accessed=bytes_accessed),
    )(x, eps, w1b, b1f, w2b, b2f, whb, bhf)

    pi_action = out[:B, :N_ACT]
    logp_pi = out[:B, N_ACT]
    return pi_action, logp_pi


def _reference_forward(obs, noise, params):
    """Pure-JAX reference using the same bf16-matmul / f32-elementwise recipe."""
    w1, b1, w2, b2, wmu, bmu, wls, bls = params
    B = obs.shape[0]
    x = obs.reshape(B, -1)

    def mm(a, w):
        return jnp.dot(a.astype(jnp.bfloat16), w.astype(jnp.bfloat16),
                       preferred_element_type=jnp.float32)

    h1 = jnp.maximum(mm(x, w1) + b1, 0.0)
    net_out = jnp.maximum(mm(h1, w2) + b2, 0.0)
    mu = mm(net_out, wmu) + bmu
    log_std = jnp.clip(mm(net_out, wls) + bls, LOG_STD_MIN, LOG_STD_MAX)
    std = jnp.exp(log_std)
    pi = mu + std * noise
    logp = jnp.sum(-0.5 * noise * noise - log_std - _HALF_LOG_2PI, axis=-1)
    logp = logp - jnp.sum(2.0 * (_LOG_2 - pi - jax.nn.softplus(-2.0 * pi)), axis=-1)
    return jnp.tanh(pi), logp


def init_params(key, d_in):
    """Deterministic PyTorch-Linear-style init: U(-1/sqrt(fan_in), +1/sqrt(fan_in))."""
    ks = jax.random.split(key, 8)

    def lin(kw, kb, fan_in, fan_out):
        bound = 1.0 / jnp.sqrt(fan_in)
        w = jax.random.uniform(kw, (fan_in, fan_out), jnp.float32, -bound, bound)
        b = jax.random.uniform(kb, (1, fan_out), jnp.float32, -bound, bound)
        return w, b

    w1, b1 = lin(ks[0], ks[1], d_in, HID)
    w2, b2 = lin(ks[2], ks[3], HID, FEAT)
    wmu, bmu = lin(ks[4], ks[5], FEAT, N_ACT)
    wls, bls = lin(ks[6], ks[7], FEAT, N_ACT)
    return (w1, b1, w2, b2, wmu, bmu, wls, bls)


if __name__ == "__main__":
    key = jax.random.PRNGKey(0)
    k_obs, k_noise, k_par = jax.random.split(key, 3)

    B, C, H, W = 2, 4, 16, 16
    obs = jax.random.normal(k_obs, (B, C, H, W), jnp.float32)
    noise = jax.random.normal(k_noise, (B, N_ACT), jnp.float32)
    params = init_params(k_par, C * H * W)

    # one-time parameter packing (outside the per-call path)
    prepared = prepare_actor_params(params)
    prepared = jax.block_until_ready(prepared)

    pi_action, logp_pi = actor_forward(obs, noise, prepared)
    jax.block_until_ready((pi_action, logp_pi))

    assert pi_action.shape == (B, N_ACT)
    assert logp_pi.shape == (B,)
    assert bool(jnp.all(jnp.isfinite(pi_action))) and bool(jnp.all(jnp.isfinite(logp_pi)))

    # validate against a pure-JAX reference with identical bf16/f32 recipe
    pi_ref, logp_ref = _reference_forward(obs, noise, params)
    assert bool(jnp.allclose(pi_action, pi_ref, atol=1e-2, rtol=1e-2))
    assert bool(jnp.allclose(logp_pi, logp_ref, atol=1e-2, rtol=1e-2))

    print("KERNEL_OK")
</pallas_src>

<mosaic_0001>
module attributes {stable_mosaic.version = 11 : i64} {
  func.func @actor_kernel(%arg0: i32, %arg1: memref<16x1024xbf16, #tpu.memory_space<vmem>>, %arg2: memref<16x128xf32, #tpu.memory_space<vmem>>, %arg3: memref<1024x256xbf16, #tpu.memory_space<vmem>>, %arg4: memref<1x256xf32, #tpu.memory_space<vmem>>, %arg5: memref<256x128xbf16, #tpu.memory_space<vmem>>, %arg6: memref<1x128xf32, #tpu.memory_space<vmem>>, %arg7: memref<128x256xbf16, #tpu.memory_space<vmem>>, %arg8: memref<1x256xf32, #tpu.memory_space<vmem>>, %arg9: memref<16x128xf32, #tpu.memory_space<vmem>>) attributes {dimension_semantics = [#tpu.dimension_semantics<parallel>], iteration_bounds = array<i64: 1>, scalar_prefetch = 0 : i64, scratch_operands = 0 : i64, tpu.core_type = #tpu.core_type<tc>, window_params = [{transform_indices = @transform_0, window_bounds = array<i64: 16, 1024>}, {transform_indices = @transform_1, window_bounds = array<i64: 16, 128>}, {pipeline_mode = #tpu.pipeline_mode<synchronous>, transform_indices = @transform_2, window_bounds = array<i64: 1024, 256>}, {pipeline_mode = #tpu.pipeline_mode<synchronous>, transform_indices = @transform_3, window_bounds = array<i64: 1, 256>}, {pipeline_mode = #tpu.pipeline_mode<synchronous>, transform_indices = @transform_4, window_bounds = array<i64: 256, 128>}, {pipeline_mode = #tpu.pipeline_mode<synchronous>, transform_indices = @transform_5, window_bounds = array<i64: 1, 128>}, {pipeline_mode = #tpu.pipeline_mode<synchronous>, transform_indices = @transform_6, window_bounds = array<i64: 128, 256>}, {pipeline_mode = #tpu.pipeline_mode<synchronous>, transform_indices = @transform_7, window_bounds = array<i64: 1, 256>}, {transform_indices = @transform_8, window_bounds = array<i64: 16, 128>}]} {
    %c0 = arith.constant 0 : index
    %c0_0 = arith.constant 0 : index
    %0 = vector.load %arg1[%c0, %c0_0] : memref<16x1024xbf16, #tpu.memory_space<vmem>>, vector<16x1024xbf16>
    %c0_1 = arith.constant 0 : index
    %c0_2 = arith.constant 0 : index
    %1 = vector.load %arg3[%c0_1, %c0_2] : memref<1024x256xbf16, #tpu.memory_space<vmem>>, vector<1024x256xbf16>
    %cst = arith.constant dense<0.000000e+00> : vector<16x256xf32>
    %2 = tpu.matmul %0, %1, %cst {dimension_numbers = #tpu.dot_dimension_numbers<[1], [0], [0], [1], [0, 0, 1, 1], [], []>} : vector<16x1024xbf16>, vector<1024x256xbf16>, vector<16x256xf32> -> vector<16x256xf32>
    %c0_3 = arith.constant 0 : index
    %c0_4 = arith.constant 0 : index
    %3 = vector.load %arg4[%c0_3, %c0_4] : memref<1x256xf32, #tpu.memory_space<vmem>>, vector<1x256xf32>
    %4 = vector.broadcast %3 : vector<1x256xf32> to vector<16x256xf32>
    %5 = arith.addf %2, %4 : vector<16x256xf32>
    %cst_5 = arith.constant 0.000000e+00 : f32
    %6 = vector.broadcast %cst_5 : f32 to vector<16x256xf32>
    %7 = arith.maximumf %5, %6 : vector<16x256xf32>
    %8 = arith.truncf %7 : vector<16x256xf32> to vector<16x256xbf16>
    %c0_6 = arith.constant 0 : index
    %c0_7 = arith.constant 0 : index
    %9 = vector.load %arg5[%c0_6, %c0_7] : memref<256x128xbf16, #tpu.memory_space<vmem>>, vector<256x128xbf16>
    %cst_8 = arith.constant dense<0.000000e+00> : vector<16x128xf32>
    %10 = tpu.matmul %8, %9, %cst_8 {dimension_numbers = #tpu.dot_dimension_numbers<[1], [0], [0], [1], [0, 0, 1, 1], [], []>} : vector<16x256xbf16>, vector<256x128xbf16>, vector<16x128xf32> -> vector<16x128xf32>
    %c0_9 = arith.constant 0 : index
    %c0_10 = arith.constant 0 : index
    %11 = vector.load %arg6[%c0_9, %c0_10] : memref<1x128xf32, #tpu.memory_space<vmem>>, vector<1x128xf32>
    %12 = vector.broadcast %11 : vector<1x128xf32> to vector<16x128xf32>
    %13 = arith.addf %10, %12 : vector<16x128xf32>
    %cst_11 = arith.constant 0.000000e+00 : f32
    %14 = vector.broadcast %cst_11 : f32 to vector<16x128xf32>
    %15 = arith.maximumf %13, %14 : vector<16x128xf32>
    %16 = arith.truncf %15 : vector<16x128xf32> to vector<16x128xbf16>
    %c0_12 = arith.constant 0 : index
    %c0_13 = arith.constant 0 : index
    %17 = vector.load %arg7[%c0_12, %c0_13] : memref<128x256xbf16, #tpu.memory_space<vmem>>, vector<128x256xbf16>
    %cst_14 = arith.constant dense<0.000000e+00> : vector<16x256xf32>
    %18 = tpu.matmul %16, %17, %cst_14 {dimension_numbers = #tpu.dot_dimension_numbers<[1], [0], [0], [1], [0, 0, 1, 1], [], []>} : vector<16x128xbf16>, vector<128x256xbf16>, vector<16x256xf32> -> vector<16x256xf32>
    %c0_15 = arith.constant 0 : index
    %c0_16 = arith.constant 0 : index
    %19 = vector.load %arg8[%c0_15, %c0_16] : memref<1x256xf32, #tpu.memory_space<vmem>>, vector<1x256xf32>
    %20 = vector.broadcast %19 : vector<1x256xf32> to vector<16x256xf32>
    %21 = arith.addf %18, %20 : vector<16x256xf32>
    %22 = vector.extract_strided_slice %21 {offsets = [0, 0], sizes = [16, 128], strides = [1, 1]} : vector<16x256xf32> to vector<16x128xf32>
    %23 = vector.extract_strided_slice %21 {offsets = [0, 128], sizes = [16, 128], strides = [1, 1]} : vector<16x256xf32> to vector<16x128xf32>
    %cst_17 = arith.constant -2.000000e+01 : f32
    %cst_18 = arith.constant 2.000000e+00 : f32
    %24 = vector.broadcast %cst_17 : f32 to vector<16x128xf32>
    %25 = arith.maximumf %24, %23 : vector<16x128xf32>
    %26 = vector.broadcast %cst_18 : f32 to vector<16x128xf32>
    %27 = arith.minimumf %26, %25 : vector<16x128xf32>
    %28 = math.exp %27 : vector<16x128xf32>
    %c0_19 = arith.constant 0 : index
    %c0_20 = arith.constant 0 : index
    %29 = vector.load %arg2[%c0_19, %c0_20] : memref<16x128xf32, #tpu.memory_space<vmem>>, vector<16x128xf32>
    %30 = arith.mulf %28, %29 : vector<16x128xf32>
    %31 = arith.addf %22, %30 : vector<16x128xf32>
    %32 = tpu.iota {dimensions = array<i32: 1>} : vector<16x128xi32>
    %c5_i32 = arith.constant 5 : i32
    %33 = vector.broadcast %c5_i32 : i32 to vector<16x128xi32>
    %34 = arith.cmpi slt, %32, %33 : vector<16x128xi32>
    %cst_21 = arith.constant -5.000000e-01 : f32
    %35 = vector.broadcast %cst_21 : f32 to vector<16x128xf32>
    %36 = arith.mulf %35, %29 : vector<16x128xf32>
    %37 = arith.mulf %36, %29 : vector<16x128xf32>
    %38 = arith.subf %37, %27 : vector<16x128xf32>
    %cst_22 = arith.constant 0.918938517 : f32
    %39 = vector.broadcast %cst_22 : f32 to vector<16x128xf32>
    %40 = arith.subf %38, %39 : vector<16x128xf32>
    %cst_23 = arith.constant 0.693147182 : f32
    %41 = vector.broadcast %cst_23 : f32 to vector<16x128xf32>
    %42 = arith.subf %41, %31 : vector<16x128xf32>
    %cst_24 = arith.constant -2.000000e+00 : f32
    %43 = vector.broadcast %cst_24 : f32 to vector<16x128xf32>
    %44 = arith.mulf %43, %31 : vector<16x128xf32>
    %cst_25 = arith.constant 0.000000e+00 : f32
    %45 = vector.broadcast %cst_25 : f32 to vector<16x128xf32>
    %46 = arith.maximumf %44, %45 : vector<16x128xf32>
    %47 = math.absf %44 : vector<16x128xf32>
    %cst_26 = arith.constant 0.000000e+00 : f32
    %48 = vector.broadcast %cst_26 : f32 to vector<16x128xf32>
    %49 = arith.subf %48, %47 : vector<16x128xf32>
    %50 = math.exp %49 : vector<16x128xf32>
    %51 = math.log1p %50 : vector<16x128xf32>
    %52 = arith.addf %46, %51 : vector<16x128xf32>
    %53 = arith.subf %42, %52 : vector<16x128xf32>
    %cst_27 = arith.constant 2.000000e+00 : f32
    %54 = vector.broadcast %cst_27 : f32 to vector<16x128xf32>
    %55 = arith.mulf %54, %53 : vector<16x128xf32>
    %56 = arith.subf %40, %55 : vector<16x128xf32>
    %cst_28 = arith.constant 0.000000e+00 : f32
    %57 = vector.broadcast %cst_28 : f32 to vector<16x128xf32>
    %58 = arith.select %34, %56, %57 : vector<16x128xi1>, vector<16x128xf32>
    %cst_29 = arith.constant dense<0.000000e+00> : vector<16xf32>
    %59 = vector.multi_reduction <add>, %58, %cst_29 [1] : vector<16x128xf32> to vector<16xf32>
    %60 = vector.shape_cast %59 : vector<16xf32> to vector<16x1xf32>
    %61 = math.tanh %31 : vector<16x128xf32>
    %c5_i32_30 = arith.constant 5 : i32
    %62 = vector.broadcast %c5_i32_30 : i32 to vector<16x128xi32>
    %63 = arith.cmpi eq, %32, %62 : vector<16x128xi32>
    %64 = vector.shape_cast %60 : vector<16x1xf32> to vector<16x1xf32>
    %65 = vector.broadcast %64 : vector<16x1xf32> to vector<16x128xf32>
    %66 = arith.select %63, %65, %61 : vector<16x128xi1>, vector<16x128xf32>
    %c0_31 = arith.constant 0 : index
    %c0_32 = arith.constant 0 : index
    %67 = vector.load %arg9[%c0_31, %c0_32] : memref<16x128xf32, #tpu.memory_space<vmem>>, vector<16x128xf32>
    tpu.vector_store %arg9[%c0_31, %c0_32], %66 {strides = array<i32>} : memref<16x128xf32, #tpu.memory_space<vmem>>, vector<16x128xf32>,
    return
  }
  func.func @transform_0(%arg0: i32) -> (i32, i32) {
    %c0_i32 = arith.constant 0 : i32
    %c0_i32_0 = arith.constant 0 : i32
    return %arg0, %c0_i32 : i32, i32
  }
  func.func @transform_1(%arg0: i32) -> (i32, i32) {
    %c0_i32 = arith.constant 0 : i32
    %c0_i32_0 = arith.constant 0 : i32
    return %arg0, %c0_i32 : i32, i32
  }
  func.func @transform_2(%arg0: i32) -> (i32, i32) {
    %c0_i32 = arith.constant 0 : i32
    %c0_i32_0 = arith.constant 0 : i32
    %c0_i32_1 = arith.constant 0 : i32
    return %c0_i32, %c0_i32_0 : i32, i32
  }
  func.func @transform_3(%arg0: i32) -> (i32, i32) {
    %c0_i32 = arith.constant 0 : i32
    %c0_i32_0 = arith.constant 0 : i32
    %c0_i32_1 = arith.constant 0 : i32
    return %c0_i32, %c0_i32_0 : i32, i32
  }
  func.func @transform_4(%arg0: i32) -> (i32, i32) {
    %c0_i32 = arith.constant 0 : i32
    %c0_i32_0 = arith.constant 0 : i32
    %c0_i32_1 = arith.constant 0 : i32
    return %c0_i32, %c0_i32_0 : i32, i32
  }
  func.func @transform_5(%arg0: i32) -> (i32, i32) {
    %c0_i32 = arith.constant 0 : i32
    %c0_i32_0 = arith.constant 0 : i32
    %c0_i32_1 = arith.constant 0 : i32
    return %c0_i32, %c0_i32_0 : i32, i32
  }
  func.func @transform_6(%arg0: i32) -> (i32, i32) {
    %c0_i32 = arith.constant 0 : i32
    %c0_i32_0 = arith.constant 0 : i32
    %c0_i32_1 = arith.constant 0 : i32
    return %c0_i32, %c0_i32_0 : i32, i32
  }
  func.func @transform_7(%arg0: i32) -> (i32, i32) {
    %c0_i32 = arith.constant 0 : i32
    %c0_i32_0 = arith.constant 0 : i32
    %c0_i32_1 = arith.constant 0 : i32
    return %c0_i32, %c0_i32_0 : i32, i32
  }
  func.func @transform_8(%arg0: i32) -> (i32, i32) {
    %c0_i32 = arith.constant 0 : i32
    %c0_i32_0 = arith.constant 0 : i32
    return %arg0, %c0_i32 : i32, i32
  }
}

</mosaic_0001>

<bundles_post_ra>
// kernel: actor_forward.1
= control target key start
LH: loop header
LB: loop body
LE: loop exit
PB: predicated region body
PF: predicated region fallthrough
CT: control target
= control target key end

     0   :  { %13 = vsyncpa [#allocation3], 0  ;;  %s1948_s27 = smov [#allocation2]   ;;  %s2196_s0 = inlined_call_operand.vmem [shape: bf16[16,1024], index: 0, kind: input, shape index: {}]   ;;  %s2197_s1 = inlined_call_operand.vmem [shape: f32[16,128], index: 1, kind: input, shape index: {}]   ;;  %s2198_s2 = inlined_call_operand.hbm [shape: bf16[1024,256], index: 2, kind: input, shape index: {}]   ;;  %s2199_s3 = inlined_call_operand.vmem [shape: f32[1,256], index: 3, kind: input, shape index: {}]   ;;  %s2200_s4 = inlined_call_operand.vmem [shape: bf16[256,128], index: 4, kind: input, shape index: {}]   ;;  %s2201_s5 = inlined_call_operand.vmem [shape: f32[1,128], index: 5, kind: input, shape index: {}]   ;;  %s2202_s6 = inlined_call_operand.vmem [shape: bf16[128,256], index: 6, kind: input, shape index: {}]   ;;  %s2203_s7 = inlined_call_operand.vmem [shape: f32[1,256], index: 7, kind: input, shape index: {}]   ;;  %s2204_s8 = inlined_call_operand.vmem [shape: f32[16,128], index: 8, kind: output, shape index: {}]  }
   0x1   :  { %s23_s28 = sshll.u32 %s1948_s27, 4  ;;  %s1924_s9 = scalar_lea.hbm %s2198_s2, 16384  ;;  %s24_s28 = int_to_ptr.vmem [resolvable:$true] %s23_s28 }
   0x2   :  { %p1925_p0 = scmp.ne.s32.totalorder %s2198_s2, %s1924_s9  ;;  %p1928_p1 = scmp.lt.u32.totalorder %s1924_s9, %s2198_s2 }
   0x4   :  { %p1930_p2 = pnand %p1928_p1, %p1925_p0 }
   0x6   :  { %1933 = shalt.err (!%p1930_p2)
}
   0x7   :  { %s1934_s14 = scalar_lea.vmem %s24_s28, 16384  ;;  %p1939_p4 = scmp.lt.s32.totalorder %s24_s28, %s24_s28 }
   0x8   :  { %p1935_p3 = scmp.ne.s32.totalorder %s24_s28, %s1934_s14  ;;  %p1940_p5 = scmp.lt.s32.totalorder %s1934_s14, %s1934_s14 }
   0xa   :  { %p1941_p6 = por %p1940_p5, %p1939_p4 }
   0xc   :  { %p1942_p7 = pnand %p1941_p6, %p1935_p3 }
   0xe   :  { %1945 = shalt.err (!%p1942_p7)
}
   0xf   :  { %s1949_s15 = smov 128   ;;  %s1950_s16 = smov 8  }
  0x10   :  { %29 = dma.hbm_to_vmem [thread:$0]  %s2198_s2, 16384, %s24_s28, [#allocation3], %s1949_s15, %s1949_s15, %s1950_s16  }
  0x11   :  { %1946 = dma.done.wait [#allocation3], 16384  }
  0x12   :  { %1947 = vsyncadd [#allocation3], 4294950912  ;;  %v1676_v0 = vld [vmem:[#allocation2 + $0x104] ss:$8 sps:$4 sm:$0xff]   ;;  %v1678_v1 = vld [vmem:[#allocation2 + $0x100] ss:$8 sps:$4 sm:$0xff]  }
  0x13   :  { %915 = vmatprep.subr.bf16.mxu0 %v1676_v0  ;;  %v1679_v2 = vld [vmem:[#allocation2 + $0x114] ss:$8 sps:$4 sm:$0xff]   ;;  %v1681_v3 = vld [vmem:[#allocation2 + $0x110] ss:$8 sps:$4 sm:$0xff]   ;;  %v1682_v4 = vld [vmem:[#allocation2 + $0x124] ss:$8 sps:$4 sm:$0xff]  }
  0x14   :  { %916 = vmatpush1.bf16.msra.mxu0 %v1678_v1  ;;  %v1684_v5 = vld [vmem:[#allocation2 + $0x120] ss:$8 sps:$4 sm:$0xff]   ;;  %v1685_v6 = vld [vmem:[#allocation2 + $0x134] ss:$8 sps:$4 sm:$0xff]   ;;  %v1687_v7 = vld [vmem:[#allocation2 + $0x130] ss:$8 sps:$4 sm:$0xff]  }
  0x15   :  { %917 = vmatprep.subr.bf16.mxu0 %v1679_v2  ;;  %v1688_v8 = vld [vmem:[#allocation2 + $0x144] ss:$8 sps:$4 sm:$0xff]   ;;  %v1690_v9 = vld [vmem:[#allocation2 + $0x140] ss:$8 sps:$4 sm:$0xff]   ;;  %v1691_v10 = vld [vmem:[#allocation2 + $0x154] ss:$8 sps:$4 sm:$0xff]  }
  0x16   :  { %v1693_v11 = vld [vmem:[#allocation2 + $0x150] ss:$8 sps:$4 sm:$0xff]   ;;  %v1694_v12 = vld [vmem:[#allocation2 + $0x164] ss:$8 sps:$4 sm:$0xff]   ;;  %v1696_v16 = vld [vmem:[#allocation2 + $0x160] ss:$8 sps:$4 sm:$0xff]  }
  0x17   :  { %v2012_v13 = vld [vmem:[%s2196_s0 + $0x8] sm:$0xff]  ;;  %v1697_v17 = vld [vmem:[#allocation2 + $0x174] ss:$8 sps:$4 sm:$0xff]   ;;  %v1699_v18 = vld [vmem:[#allocation2 + $0x170] ss:$8 sps:$4 sm:$0xff]  }
  0x18   :  { %918 = vmatpush1.bf16.msra.mxu0 %v1681_v3  ;;  %v2017_v14 = vld [vmem:[%s2196_s0 + $0x28] sm:$0xff]  ;;  %v1703_v21 = vld [vmem:[#allocation2 + $0x194] ss:$8 sps:$4 sm:$0xff]   ;;  %v1705_v22 = vld [vmem:[#allocation2 + $0x190] ss:$8 sps:$4 sm:$0xff]  }
  0x19   :  { %919 = vmatprep.subr.bf16.mxu0 %v1682_v4  ;;  %v1466_v15 = vcombine.high %v2012_v13, %v2017_v14  ;;  %v1700_v19 = vld [vmem:[#allocation2 + $0x184] ss:$8 sps:$4 sm:$0xff]   ;;  %v1702_v20 = vld [vmem:[#allocation2 + $0x180] ss:$8 sps:$4 sm:$0xff]   ;;  %v1709_v25 = vld [vmem:[#allocation2 + $0x1b4] ss:$8 sps:$4 sm:$0xff]   ;;  %v1465_v50 = vcombine.low %v2012_v13, %v2017_v14 }
  0x1a   :  { %v1706_v23 = vld [vmem:[#allocation2 + $0x1a4] ss:$8 sps:$4 sm:$0xff]   ;;  %v1708_v24 = vld [vmem:[#allocation2 + $0x1a0] ss:$8 sps:$4 sm:$0xff]   ;;  %v1711_v26 = vld [vmem:[#allocation2 + $0x1b0] ss:$8 sps:$4 sm:$0xff]  }
  0x1b   :  { %947 = vmatprep.mubr.bf16.mxu0 %v1466_v15  ;;  %v1769_v27 = vld [vmem:[#allocation2 + $0x4] ss:$8 sps:$4 sm:$0xff]   ;;  %v1771_v28 = vld [vmem:[#allocation2] ss:$8 sps:$4 sm:$0xff]   ;;  %v1775_v30 = vld [vmem:[#allocation2 + $0x14] ss:$8 sps:$4 sm:$0xff]  }
  0x1c   :  { %920 = vmatpush1.bf16.msra.mxu0 %v1684_v5  ;;  %v1712_v29 = vld [vmem:[#allocation2 + $0x1c4] ss:$8 sps:$4 sm:$0xff]   ;;  %872 = vmatprep.subr.bf16.mxu1 %v1769_v27  ;;  %v1777_v31 = vld [vmem:[#allocation2 + $0x10] ss:$8 sps:$4 sm:$0xff]   ;;  %v1714_v32 = vld [vmem:[#allocation2 + $0x1c0] ss:$8 sps:$4 sm:$0xff]  }
  0x1d   :  { %921 = vmatprep.subr.bf16.mxu0 %v1685_v6  ;;  %873 = vmatpush1.bf16.msra.mxu1 %v1771_v28  ;;  %v1715_v33 = vld [vmem:[#allocation2 + $0x1d4] ss:$8 sps:$4 sm:$0xff]   ;;  %v1781_v34 = vld [vmem:[#allocation2 + $0x24] ss:$8 sps:$4 sm:$0xff]   ;;  %v1783_v35 = vld [vmem:[#allocation2 + $0x20] ss:$8 sps:$4 sm:$0xff]  }
  0x1e   :  { %874 = vmatprep.subr.bf16.mxu1 %v1775_v30  ;;  %v1717_v36 = vld [vmem:[#allocation2 + $0x1d0] ss:$8 sps:$4 sm:$0xff]   ;;  %v1787_v37 = vld [vmem:[#allocation2 + $0x34] ss:$8 sps:$4 sm:$0xff]   ;;  %v1718_v38 = vld [vmem:[#allocation2 + $0x1e4] ss:$8 sps:$4 sm:$0xff]  }
  0x1f   :  { %v1789_v39 = vld [vmem:[#allocation2 + $0x30] ss:$8 sps:$4 sm:$0xff]   ;;  %v1793_v40 = vld [vmem:[#allocation2 + $0x44] ss:$8 sps:$4 sm:$0xff]   ;;  %v1720_v41 = vld [vmem:[#allocation2 + $0x1e0] ss:$8 sps:$4 sm:$0xff]  }
  0x20   :  { %922 = vmatpush1.bf16.msra.mxu0 %v1687_v7  ;;  %v1721_v42 = vld [vmem:[#allocation2 + $0x1f4] ss:$8 sps:$4 sm:$0xff]   ;;  %v1795_v43 = vld [vmem:[#allocation2 + $0x40] ss:$8 sps:$4 sm:$0xff]   ;;  %v1723_v44 = vld [vmem:[#allocation2 + $0x1f0] ss:$8 sps:$4 sm:$0xff]  }
  0x21   :  { %923 = vmatprep.subr.bf16.mxu0 %v1688_v8  ;;  %875 = vmatpush1.bf16.msra.mxu1 %v1777_v31  ;;  %v1799_v45 = vld [vmem:[#allocation2 + $0x54] ss:$8 sps:$4 sm:$0xff]   ;;  %v1726_v46 = vld [vmem:[#allocation2 + $0x204] ss:$8 sps:$4 sm:$0xff]   ;;  %v1801_v49 = vld [vmem:[#allocation2 + $0x50] ss:$8 sps:$4 sm:$0xff]  }
  0x22   :  { %876 = vmatprep.subr.bf16.mxu1 %v1781_v34  ;;  %v2024_v47 = vld [vmem:[%s2196_s0 + $0x10] sm:$0xff]  ;;  %v1805_v51 = vld [vmem:[#allocation2 + $0x64] ss:$8 sps:$4 sm:$0xff]   ;;  %v1724_v52 = vld [vmem:[#allocation2 + $0x200] ss:$8 sps:$4 sm:$0xff]  }
  0x23   :  { %v2029_v48 = vld [vmem:[%s2196_s0 + $0x30] sm:$0xff]  ;;  %v1807_v55 = vld [vmem:[#allocation2 + $0x60] ss:$8 sps:$4 sm:$0xff]   ;;  %v1732_v58 = vld [vmem:[#allocation2 + $0x224] ss:$8 sps:$4 sm:$0xff]  }
  0x24   :  { %924 = vmatpush1.bf16.msra.mxu0 %v1690_v9  ;;  %v1468_v53 = vcombine.high %v2024_v47, %v2029_v48  ;;  %v1729_v54 = vld [vmem:[#allocation2 + $0x214] ss:$8 sps:$4 sm:$0xff]   ;;  %v1727_v57 = vld [vmem:[#allocation2 + $0x210] ss:$8 sps:$4 sm:$0xff]   ;;  %v1817_v60 = vld [vmem:[#allocation2 + $0x84] ss:$8 sps:$4 sm:$0xff]  }
  0x25   :  { %925 = vmatprep.subr.bf16.mxu0 %v1691_v10  ;;  %877 = vmatpush1.bf16.msra.mxu1 %v1783_v35  ;;  %v1811_v56 = vld [vmem:[#allocation2 + $0x74] ss:$8 sps:$4 sm:$0xff]   ;;  %v1813_v59 = vld [vmem:[#allocation2 + $0x70] ss:$8 sps:$4 sm:$0xff]   ;;  %v1730_v61 = vld [vmem:[#allocation2 + $0x220] ss:$8 sps:$4 sm:$0xff]  }
  0x26   :  { %878 = vmatprep.subr.bf16.mxu1 %v1787_v37  ;;  %v1735_v62 = vld [vmem:[#allocation2 + $0x234] ss:$8 sps:$4 sm:$0xff]   ;;  %v1819_v63 = vld [vmem:[#allocation2 + $0x80] ss:$8 sps:$4 sm:$0xff]   ;;  %v1733_v1 = vld [vmem:[#allocation2 + $0x230] ss:$8 sps:$4 sm:$0xff]  }
  0x27   :  { %v1823_v0 = vld [vmem:[#allocation2 + $0x94] ss:$8 sps:$4 sm:$0xff]   ;;  %v1738_v2 = vld [vmem:[#allocation2 + $0x244] ss:$8 sps:$4 sm:$0xff]   ;;  %v1825_v3 = vld [vmem:[#allocation2 + $0x90] ss:$8 sps:$4 sm:$0xff]  }
  0x28   :  { %926 = vmatpush1.bf16.msra.mxu0 %v1693_v11  ;;  %v1829_v4 = vld [vmem:[#allocation2 + $0xa4] ss:$8 sps:$4 sm:$0xff]   ;;  %v1736_v5 = vld [vmem:[#allocation2 + $0x240] ss:$8 sps:$4 sm:$0xff]   ;;  %v1741_v6 = vld [vmem:[#allocation2 + $0x254] ss:$8 sps:$4 sm:$0xff]  }
  0x29   :  { %927 = vmatprep.subr.bf16.mxu0 %v1694_v12  ;;  %879 = vmatpush1.bf16.msra.mxu1 %v1789_v39  ;;  %v1831_v7 = vld [vmem:[#allocation2 + $0xa0] ss:$8 sps:$4 sm:$0xff]   ;;  %v1835_v8 = vld [vmem:[#allocation2 + $0xb4] ss:$8 sps:$4 sm:$0xff]   ;;  %v1739_v9 = vld [vmem:[#allocation2 + $0x250] ss:$8 sps:$4 sm:$0xff]  }
  0x2a   :  { %880 = vmatprep.subr.bf16.mxu1 %v1793_v40  ;;  %v1744_v10 = vld [vmem:[#allocation2 + $0x264] ss:$8 sps:$4 sm:$0xff]   ;;  %v1837_v11 = vld [vmem:[#allocation2 + $0xb0] ss:$8 sps:$4 sm:$0xff]   ;;  %v1859_v27 = vld [vmem:[#allocation2 + $0xf4] ss:$8 sps:$4 sm:$0xff]  }
  0x2b   :  { %v44_v12 = vld [vmem:[%s2196_s0] sm:$0xff]  ;;  %v1751_v28 = vld [vmem:[#allocation2 + $0x290] ss:$8 sps:$4 sm:$0xff]   ;;  %v1871_v39 = vld [vmem:[%s2200_s4 + $0x8] sm:$0xff]  }
  0x2c   :  { %928 = vmatpush1.bf16.msra.mxu0 %v1696_v16  ;;  %v48_v13 = vld [vmem:[%s2196_s0 + $0x20] sm:$0xff]  ;;  %v1861_v30 = vld [vmem:[#allocation2 + $0xf0] ss:$8 sps:$4 sm:$0xff]  }
  0x2d   :  { %929 = vmatprep.subr.bf16.mxu0 %v1697_v17  ;;  %881 = vmatpush1.bf16.msra.mxu1 %v1795_v43  ;;  %v1841_v14 = vld [vmem:[#allocation2 + $0xc4] ss:$8 sps:$4 sm:$0xff]   ;;  %v1464_v15 = vcombine.high %v44_v12, %v48_v13  ;;  %v1742_v16 = vld [vmem:[#allocation2 + $0x260] ss:$8 sps:$4 sm:$0xff]   ;;  %v1747_v17 = vld [vmem:[#allocation2 + $0x274] ss:$8 sps:$4 sm:$0xff]   ;;  %v1463_v35 = vcombine.low %v44_v12, %v48_v13 }
  0x2e   :  { %882 = vmatprep.subr.bf16.mxu1 %v1799_v45  ;;  %v1868_v31 = vld [vmem:[%s2200_s4 + $0x40] sm:$0xff]   ;;  %v1757_v37 = vld [vmem:[#allocation2 + $0x2b0] ss:$8 sps:$4 sm:$0xff]   ;;  %v1846_v13 = vld [vmem:[#allocation2 + $0x3b4] ss:$8 sps:$4 sm:$0xff]  }
  0x2f   :  { %904 = vmatprep.mubr.bf16.mxu1 %v1464_v15  ;;  %v1869_v34 = vld [vmem:[%s2200_s4] sm:$0xff]   ;;  %v1872_v40 = vld [vmem:[%s2200_s4 + $0x50] sm:$0xff]  }
  0x30   :  { %930 = vmatpush1.bf16.msra.mxu0 %v1699_v18  ;;  %v1843_v18 = vld [vmem:[#allocation2 + $0xc0] ss:$8 sps:$4 sm:$0xff]   ;;  %v1873_v43 = vld [vmem:[%s2200_s4 + $0x10] sm:$0xff]   ;;  %v1852_v15 = vld [vmem:[#allocation2 + $0x3c4] ss:$8 sps:$4 sm:$0xff]  }
  0x31   :  { %931 = vmatprep.subr.bf16.mxu0 %v1700_v19  ;;  %883 = vmatpush1.bf16.msra.mxu1 %v1801_v49  ;;  %v1847_v19 = vld [vmem:[#allocation2 + $0xd4] ss:$8 sps:$4 sm:$0xff]   ;;  %v1763_v45 = vld [vmem:[#allocation2 + $0x2d0] ss:$8 sps:$4 sm:$0xff]   ;;  %v1838_v12 = vld [vmem:[#allocation2 + $0x3a0] ss:$8 sps:$4 sm:$0xff]  }
  0x32   :  { %884 = vmatprep.subr.bf16.mxu1 %v1805_v51  ;;  %v1875_v49 = vld [vmem:[%s2200_s4 + $0x18] sm:$0xff]  }
  0x33   :  { %v1774_v51 = vld [vmem:[#allocation2 + $0x2f4] ss:$8 sps:$4 sm:$0xff]  }
  0x34   :  { %932 = vmatpush1.bf16.msra.mxu0 %v1702_v20  ;;  %v1745_v20 = vld [vmem:[#allocation2 + $0x270] ss:$8 sps:$4 sm:$0xff]  }
  0x35   :  { %933 = vmatprep.subr.bf16.mxu0 %v1703_v21  ;;  %885 = vmatpush1.bf16.msra.mxu1 %v1807_v55  ;;  %v1750_v21 = vld [vmem:[#allocation2 + $0x284] ss:$8 sps:$4 sm:$0xff]   ;;  %v2073_v55 = vld [vmem:[%s2196_s0 + $0x38] sm:$0xff] }
  0x36   :  { %886 = vmatprep.subr.bf16.mxu1 %v1811_v56  ;;  %v1467_v56 = vcombine.low %v2024_v47, %v2029_v48  ;;  %v1804_v47 = vld [vmem:[#allocation2 + $0x344] ss:$8 sps:$4 sm:$0xff]   ;;  %v1802_v48 = vld [vmem:[#allocation2 + $0x340] ss:$8 sps:$4 sm:$0xff]  }
  0x38   :  { %934 = vmatpush1.bf16.msra.mxu0 %v1705_v22  ;;  %v1748_v22 = vld [vmem:[#allocation2 + $0x280] ss:$8 sps:$4 sm:$0xff]  }
  0x39   :  { %935 = vmatprep.subr.bf16.mxu0 %v1706_v23  ;;  %887 = vmatpush1.bf16.msra.mxu1 %v1813_v59  ;;  %v1849_v23 = vld [vmem:[#allocation2 + $0xd0] ss:$8 sps:$4 sm:$0xff]   ;;  %v1786_v59 = vld [vmem:[#allocation2 + $0x314] ss:$8 sps:$4 sm:$0xff]  }
  0x3a   :  { %888 = vmatprep.subr.bf16.mxu1 %v1817_v60  ;;  %v1784_v60 = vld [vmem:[#allocation2 + $0x310] ss:$8 sps:$4 sm:$0xff]  }
  0x3c   :  { %936 = vmatpush1.bf16.msra.mxu0 %v1708_v24  ;;  %v1753_v24 = vld [vmem:[#allocation2 + $0x294] ss:$8 sps:$4 sm:$0xff]  }
  0x3d   :  { %937 = vmatprep.subr.bf16.mxu0 %v1709_v25  ;;  %889 = vmatpush1.bf16.msra.mxu1 %v1819_v63  ;;  %v1853_v25 = vld [vmem:[#allocation2 + $0xe4] ss:$8 sps:$4 sm:$0xff]   ;;  %v1798_v63 = vld [vmem:[#allocation2 + $0x334] ss:$8 sps:$4 sm:$0xff]  }
  0x3e   :  { %890 = vmatprep.subr.bf16.mxu1 %v1823_v0  ;;  %v1796_v0 = vld [vmem:[#allocation2 + $0x330] ss:$8 sps:$4 sm:$0xff]  }
  0x40   :  { %938 = vmatpush1.bf16.msra.mxu0 %v1711_v26  ;;  %v1855_v26 = vld [vmem:[#allocation2 + $0xe0] ss:$8 sps:$4 sm:$0xff]  }
  0x41   :  { %939 = vmatprep.subr.bf16.mxu0 %v1712_v29  ;;  %891 = vmatpush1.bf16.msra.mxu1 %v1825_v3  ;;  %v1756_v29 = vld [vmem:[#allocation2 + $0x2a4] ss:$8 sps:$4 sm:$0xff]  }
  0x42   :  { %892 = vmatprep.subr.bf16.mxu1 %v1829_v4  ;;  %v1816_v3 = vld [vmem:[#allocation2 + $0x364] ss:$8 sps:$4 sm:$0xff]   ;;  %v1814_v4 = vld [vmem:[#allocation2 + $0x360] ss:$8 sps:$4 sm:$0xff]  }
  0x44   :  { %940 = vmatpush1.bf16.msra.mxu0 %v1714_v32  ;;  %v1754_v32 = vld [vmem:[#allocation2 + $0x2a0] ss:$8 sps:$4 sm:$0xff]  }
  0x45   :  { %941 = vmatprep.subr.bf16.mxu0 %v1715_v33  ;;  %893 = vmatpush1.bf16.msra.mxu1 %v1831_v7  ;;  %v1759_v33 = vld [vmem:[#allocation2 + $0x2b4] ss:$8 sps:$4 sm:$0xff]   ;;  %v1828_v7 = vld [vmem:[#allocation2 + $0x384] ss:$8 sps:$4 sm:$0xff]  }
  0x46   :  { %894 = vmatprep.subr.bf16.mxu1 %v1835_v8  ;;  %v1826_v8 = vld [vmem:[#allocation2 + $0x380] ss:$8 sps:$4 sm:$0xff]  }
  0x48   :  { %942 = vmatpush1.bf16.msra.mxu0 %v1717_v36  ;;  %v1870_v36 = vld [vmem:[%s2200_s4 + $0x48] sm:$0xff]  }
  0x49   :  { %943 = vmatprep.subr.bf16.mxu0 %v1718_v38  ;;  %895 = vmatpush1.bf16.msra.mxu1 %v1837_v11  ;;  %v1762_v38 = vld [vmem:[#allocation2 + $0x2c4] ss:$8 sps:$4 sm:$0xff]  }
  0x4a   :  { %896 = vmatprep.subr.bf16.mxu1 %v1841_v14  ;;  %v1840_v11 = vld [vmem:[#allocation2 + $0x3a4] ss:$8 sps:$4 sm:$0xff]   ;;  %v1844_v14 = vld [vmem:[#allocation2 + $0x3b0] ss:$8 sps:$4 sm:$0xff]  }
  0x4c   :  { %944 = vmatpush1.bf16.msra.mxu0 %v1720_v41  ;;  %v1760_v41 = vld [vmem:[#allocation2 + $0x2c0] ss:$8 sps:$4 sm:$0xff]  }
  0x4d   :  { %945 = vmatprep.subr.bf16.mxu0 %v1721_v42  ;;  %897 = vmatpush1.bf16.msra.mxu1 %v1843_v18  ;;  %v1765_v42 = vld [vmem:[#allocation2 + $0x2d4] ss:$8 sps:$4 sm:$0xff]   ;;  %v1856_v18 = vld [vmem:[#allocation2 + $0x3d0] ss:$8 sps:$4 sm:$0xff]  }
  0x4e   :  { %898 = vmatprep.subr.bf16.mxu1 %v1847_v19  ;;  %v1864_v19 = vld [vmem:[#allocation2 + $0x3e4] ss:$8 sps:$4 sm:$0xff]  }
  0x50   :  { %946 = vmatpush1.bf16.msra.mxu0 %v1723_v44  ;;  %v1874_v44 = vld [vmem:[%s2200_s4 + $0x58] sm:$0xff]  }
  0x51   :  { %958 = vmatprep.subr.bf16.mxu0 %v1726_v46  ;;  %899 = vmatpush1.bf16.msra.mxu1 %v1849_v23  ;;  %v1768_v46 = vld [vmem:[#allocation2 + $0x2e4] ss:$8 sps:$4 sm:$0xff]  }
  0x52   :  { %900 = vmatprep.subr.bf16.mxu1 %v1853_v25  ;;  %v1877_v25 = vld [vmem:[%s2200_s4 + $0x20] sm:$0xff]  }
  0x53   :  { %948 = vmatmul.mubr.bf16.vlgmr.msra.gmra.mrb[0].mxu0 %v1465_v50  ;;  %v1766_v50 = vld [vmem:[#allocation2 + $0x2e0] ss:$8 sps:$4 sm:$0xff]  }
  0x54   :  { %959 = vmatpush1.bf16.msra.mxu0 %v1724_v52  ;;  %990 = vmatprep.mubr.bf16.mxu0 %v1468_v53  ;;  %v1772_v52 = vld [vmem:[#allocation2 + $0x2f0] ss:$8 sps:$4 sm:$0xff]   ;;  %v1780_v53 = vld [vmem:[#allocation2 + $0x304] ss:$8 sps:$4 sm:$0xff]  }
  0x55   :  { %960 = vmatprep.subr.bf16.mxu0 %v1729_v54  ;;  %901 = vmatpush1.bf16.msra.mxu1 %v1855_v26  ;;  %v2068_v54 = vld [vmem:[%s2196_s0 + $0x18] sm:$0xff]  ;;  %v1878_v26 = vld [vmem:[%s2200_s4 + $0x68] sm:$0xff]  }
  0x56   :  { %902 = vmatprep.subr.bf16.mxu1 %v1859_v27  ;;  %v1469_v23 = vcombine.low %v2068_v54, %v2073_v55  ;;  %v1879_v27 = vld [vmem:[%s2200_s4 + $0x28] sm:$0xff]  }
  0x58   :  { %961 = vmatpush1.bf16.msra.mxu0 %v1727_v57  ;;  %v1778_v57 = vld [vmem:[#allocation2 + $0x300] ss:$8 sps:$4 sm:$0xff]  }
  0x59   :  { %962 = vmatprep.subr.bf16.mxu0 %v1732_v58  ;;  %903 = vmatpush1.bf16.msra.mxu1 %v1861_v30  ;;  %v1470_v58 = vcombine.high %v2068_v54, %v2073_v55  ;;  %v1882_v30 = vld [vmem:[%s2200_s4 + $0x78] sm:$0xff]  }
  0x5a   :  { %1634 = vmatprep.subr.bf16.mxu1 %v1868_v31  ;;  %v1883_v31 = vld [vmem:[%s2200_s4 + $0x38] sm:$0xff]  }
  0x5c   :  { %963 = vmatpush1.bf16.msra.mxu0 %v1730_v61  ;;  %905 = vmatmul.mubr.bf16.vlgmr.msra.gmra.mrb[0].mxu1 %v1463_v35  ;;  %v1792_v61 = vld [vmem:[#allocation2 + $0x324] ss:$8 sps:$4 sm:$0xff]  }
  0x5d   :  { %964 = vmatprep.subr.bf16.mxu0 %v1735_v62  ;;  %1635 = vmatpush3.bf16.msra.mxu1 %v1869_v34  ;;  %v1790_v62 = vld [vmem:[#allocation2 + $0x320] ss:$8 sps:$4 sm:$0xff]  }
  0x5e   :  { %1636 = vmatprep.subr.bf16.mxu1 %v1870_v36 }
  0x60   :  { %965 = vmatpush1.bf16.msra.mxu0 %v1733_v1  ;;  %v1810_v1 = vld [vmem:[#allocation2 + $0x354] ss:$8 sps:$4 sm:$0xff]  }
  0x61   :  { %966 = vmatprep.subr.bf16.mxu0 %v1738_v2  ;;  %1637 = vmatpush3.bf16.msra.mxu1 %v1871_v39  ;;  %v1808_v2 = vld [vmem:[#allocation2 + $0x350] ss:$8 sps:$4 sm:$0xff]  }
  0x62   :  { %1638 = vmatprep.subr.bf16.mxu1 %v1872_v40  ;;  %v180_v40 = vld [vmem:[%s2199_s3] sm:$0x3] }
  0x64   :  { %967 = vmatpush1.bf16.msra.mxu0 %v1736_v5  ;;  %v1822_v5 = vld [vmem:[#allocation2 + $0x374] ss:$8 sps:$4 sm:$0xff]  }
  0x65   :  { %968 = vmatprep.subr.bf16.mxu0 %v1741_v6  ;;  %1639 = vmatpush3.bf16.msra.mxu1 %v1873_v43  ;;  %v1820_v6 = vld [vmem:[#allocation2 + $0x370] ss:$8 sps:$4 sm:$0xff]  }
  0x66   :  { %1640 = vmatprep.subr.bf16.mxu1 %v1874_v44 }
  0x68   :  { %969 = vmatpush1.bf16.msra.mxu0 %v1739_v9  ;;  %v1834_v9 = vld [vmem:[#allocation2 + $0x394] ss:$8 sps:$4 sm:$0xff]  }
  0x69   :  { %970 = vmatprep.subr.bf16.mxu0 %v1744_v10  ;;  %1641 = vmatpush3.bf16.msra.mxu1 %v1875_v49  ;;  %v1832_v10 = vld [vmem:[#allocation2 + $0x390] ss:$8 sps:$4 sm:$0xff]  }
  0x6c   :  { %971 = vmatpush1.bf16.msra.mxu0 %v1742_v16  ;;  %v1850_v16 = vld [vmem:[#allocation2 + $0x3c0] ss:$8 sps:$4 sm:$0xff]  }
  0x6d   :  { %972 = vmatprep.subr.bf16.mxu0 %v1747_v17  ;;  %v1858_v17 = vld [vmem:[#allocation2 + $0x3d4] ss:$8 sps:$4 sm:$0xff]  }
  0x70   :  { %973 = vmatpush1.bf16.msra.mxu0 %v1745_v20  ;;  %v1862_v20 = vld [vmem:[#allocation2 + $0x3e0] ss:$8 sps:$4 sm:$0xff]  }
  0x71   :  { %974 = vmatprep.subr.bf16.mxu0 %v1750_v21  ;;  %v1867_v21 = vld [vmem:[#allocation2 + $0x3f4] ss:$8 sps:$4 sm:$0xff]  }
  0x74   :  { %975 = vmatpush1.bf16.msra.mxu0 %v1748_v22  ;;  %v1865_v22 = vld [vmem:[#allocation2 + $0x3f0] ss:$8 sps:$4 sm:$0xff]  }
  0x75   :  { %976 = vmatprep.subr.bf16.mxu0 %v1753_v24  ;;  %v1876_v24 = vld [vmem:[%s2200_s4 + $0x60] sm:$0xff]  }
  0x76   :  { %1642 = vmatprep.subr.bf16.mxu1 %v1876_v24 }
  0x77   :  { %1643 = vmatpush3.bf16.msra.mxu1 %v1877_v25 }
  0x78   :  { %977 = vmatpush1.bf16.msra.mxu0 %v1751_v28  ;;  %1644 = vmatprep.subr.bf16.mxu1 %v1878_v26  ;;  %v1880_v28 = vld [vmem:[%s2200_s4 + $0x70] sm:$0xff]   ;;  %v1245_v26 = vld [vmem:[%s2203_s7] sm:$0x3] }
  0x79   :  { %978 = vmatprep.subr.bf16.mxu0 %v1756_v29  ;;  %v1881_v29 = vld [vmem:[%s2200_s4 + $0x30] sm:$0xff]  }
  0x7b   :  { %1645 = vmatpush3.bf16.msra.mxu1 %v1879_v27 }
  0x7c   :  { %979 = vmatpush1.bf16.msra.mxu0 %v1754_v32  ;;  %1646 = vmatprep.subr.bf16.mxu1 %v1880_v28  ;;  %v1886_v32 = vld [vmem:[%s2202_s6 + $0x4] ss:$8 sps:$4 sm:$0xff]  }
  0x7d   :  { %980 = vmatprep.subr.bf16.mxu0 %v1759_v33 }
  0x7f   :  { %1647 = vmatpush3.bf16.msra.mxu1 %v1881_v29 }
  0x80   :  { %981 = vmatpush1.bf16.msra.mxu0 %v1757_v37  ;;  %1648 = vmatprep.subr.bf16.mxu1 %v1882_v30  ;;  %v182_v37 = vlaneseq }
  0x81   :  { %982 = vmatprep.subr.bf16.mxu0 %v1762_v38 }
  0x82   :  { %v2109_v38 = vshrl.u32 %v182_v37, 7 }
  0x83   :  { %1649 = vmatpush3.bf16.msra.mxu1 %v1883_v31 }
  0x84   :  { %983 = vmatpush1.bf16.msra.mxu0 %v1760_v41  ;;  %1337 = vmatprep.subr.bf16.mxu1 %v1886_v32  ;;  %v184_v39 = vsub.s32 0, %v2109_v38  ;;  %v188_v41 = vsub.s32 1, %v2109_v38 }
  0x85   :  { %984 = vmatprep.subr.bf16.mxu0 %v1765_v42 }
  0x86   :  { %v185_v42 = vrot.slane %v180_v40, %v184_v39  ;;  %v189_v43 = vrot.slane %v180_v40, %v188_v41  ;;  %v1254_v27 = vrot.slane %v1245_v26, %v188_v41  ;;  %v1250_v41 = vrot.slane %v1245_v26, %v184_v39 }
  0x88   :  { %985 = vmatpush1.bf16.msra.mxu0 %v1763_v45 }
  0x89   :  { %986 = vmatprep.subr.bf16.mxu0 %v1768_v46 }
  0x8c   :  { %987 = vmatpush1.bf16.msra.mxu0 %v1766_v50 }
  0x8d   :  { %988 = vmatprep.subr.bf16.mxu0 %v1774_v51 }
  0x90   :  { %989 = vmatpush1.bf16.msra.mxu0 %v1772_v52 }
  0x91   :  { %1001 = vmatprep.subr.bf16.mxu0 %v1780_v53 }
  0x93   :  { %991 = vmatmul.mubr.bf16.vlgmr.msra.gmra.mrb[0].mxu0 %v1467_v56 }
  0x94   :  { %1002 = vmatpush1.bf16.msra.mxu0 %v1778_v57  ;;  %1033 = vmatprep.mubr.bf16.mxu0 %v1470_v58 }
  0x95   :  { %1003 = vmatprep.subr.bf16.mxu0 %v1786_v59 }
  0x98   :  { %1004 = vmatpush1.bf16.msra.mxu0 %v1784_v60 }
  0x99   :  { %1005 = vmatprep.subr.bf16.mxu0 %v1792_v61 }
  0x9c   :  { %1006 = vmatpush1.bf16.msra.mxu0 %v1790_v62 }
  0x9d   :  { %1007 = vmatprep.subr.bf16.mxu0 %v1798_v63 }
  0xa0   :  { %1008 = vmatpush1.bf16.msra.mxu0 %v1796_v0  ;;  %v1884_v0 = vld [vmem:[%s2202_s6] ss:$8 sps:$4 sm:$0xff]  }
  0xa1   :  { %1009 = vmatprep.subr.bf16.mxu0 %v1804_v47  ;;  %v1889_v47 = vld [vmem:[%s2202_s6 + $0x14] ss:$8 sps:$4 sm:$0xff]  }
  0xa4   :  { %1010 = vmatpush1.bf16.msra.mxu0 %v1802_v48  ;;  %v1887_v48 = vld [vmem:[%s2202_s6 + $0x10] ss:$8 sps:$4 sm:$0xff]  }
  0xa5   :  { %1011 = vmatprep.subr.bf16.mxu0 %v1810_v1  ;;  %v1892_v1 = vld [vmem:[%s2202_s6 + $0x24] ss:$8 sps:$4 sm:$0xff]  }
  0xa8   :  { %1012 = vmatpush1.bf16.msra.mxu0 %v1808_v2  ;;  %v1890_v2 = vld [vmem:[%s2202_s6 + $0x20] ss:$8 sps:$4 sm:$0xff]  }
  0xa9   :  { %1013 = vmatprep.subr.bf16.mxu0 %v1816_v3  ;;  %v1895_v3 = vld [vmem:[%s2202_s6 + $0x34] ss:$8 sps:$4 sm:$0xff]  }
  0xac   :  { %1014 = vmatpush1.bf16.msra.mxu0 %v1814_v4  ;;  %v1893_v4 = vld [vmem:[%s2202_s6 + $0x30] ss:$8 sps:$4 sm:$0xff]  }
  0xad   :  { %1015 = vmatprep.subr.bf16.mxu0 %v1822_v5  ;;  %v1898_v5 = vld [vmem:[%s2202_s6 + $0x44] ss:$8 sps:$4 sm:$0xff]  }
  0xb0   :  { %1016 = vmatpush1.bf16.msra.mxu0 %v1820_v6  ;;  %v1896_v6 = vld [vmem:[%s2202_s6 + $0x40] ss:$8 sps:$4 sm:$0xff]  }
  0xb1   :  { %1017 = vmatprep.subr.bf16.mxu0 %v1828_v7  ;;  %v1901_v7 = vld [vmem:[%s2202_s6 + $0x54] ss:$8 sps:$4 sm:$0xff]  }
  0xb4   :  { %1018 = vmatpush1.bf16.msra.mxu0 %v1826_v8  ;;  %v1899_v8 = vld [vmem:[%s2202_s6 + $0x50] ss:$8 sps:$4 sm:$0xff]  }
  0xb5   :  { %1019 = vmatprep.subr.bf16.mxu0 %v1834_v9  ;;  %v1904_v9 = vld [vmem:[%s2202_s6 + $0x64] ss:$8 sps:$4 sm:$0xff]  }
  0xb8   :  { %1020 = vmatpush1.bf16.msra.mxu0 %v1832_v10  ;;  %v1902_v10 = vld [vmem:[%s2202_s6 + $0x60] ss:$8 sps:$4 sm:$0xff]  }
  0xb9   :  { %1021 = vmatprep.subr.bf16.mxu0 %v1840_v11  ;;  %v1907_v11 = vld [vmem:[%s2202_s6 + $0x74] ss:$8 sps:$4 sm:$0xff]  }
  0xbc   :  { %1022 = vmatpush1.bf16.msra.mxu0 %v1838_v12  ;;  %v1905_v12 = vld [vmem:[%s2202_s6 + $0x70] ss:$8 sps:$4 sm:$0xff]  }
  0xbd   :  { %1023 = vmatprep.subr.bf16.mxu0 %v1846_v13  ;;  %v1951_v13 = vmov 0  }
  0xc0   :  { %1024 = vmatpush1.bf16.msra.mxu0 %v1844_v14 }
  0xc1   :  { %1025 = vmatprep.subr.bf16.mxu0 %v1852_v15  ;;  %v1599_v15 = vld [vmem:[%s2201_s5] ss:$0 sm:$0xff] }
  0xc4   :  { %1026 = vmatpush1.bf16.msra.mxu0 %v1850_v16 }
  0xc5   :  { %1027 = vmatprep.subr.bf16.mxu0 %v1858_v17 }
  0xc8   :  { %1028 = vmatpush1.bf16.msra.mxu0 %v1856_v18 }
  0xc9   :  { %1029 = vmatprep.subr.bf16.mxu0 %v1864_v19 }
  0xcc   :  { %1030 = vmatpush1.bf16.msra.mxu0 %v1862_v20 }
  0xcd   :  { %1031 = vmatprep.subr.bf16.mxu0 %v1867_v21 }
  0xd0   :  { %1032 = vmatpush1.bf16.msra.mxu0 %v1865_v22 }
  0xd3   :  { %1034 = vmatmul.mubr.bf16.vlgmr.msra.gmra.mrb[0].mxu0 %v1469_v23 }
 0x12f   :  { %v906_v33 = vpop.f32.mrb[0].mxu1 }
 0x130   :  { %v908_v34 = vpop.f32.mrb[1].mxu1  ;;  %v907_v44 = vadd.f32 %v906_v33, %v185_v42 }
 0x131   :  { %v910_v35 = vpop.f32.mrb[2].mxu1  ;;  %v909_v45 = vadd.f32 %v908_v34, %v189_v43 }
 0x132   :  { %v912_v36 = vpop.f32.mrb[3].mxu1  ;;  %v911_v49 = vadd.f32 %v910_v35, %v185_v42 }
 0x133   :  { %v913_v52 = vadd.f32 %v912_v36, %v189_v43 }
 0x1a6   :  { %v1035_v46 = vpop.f32.mrb[0].mxu0 }
 0x1a7   :  { %v1657_v50 = vadd.f32 %v1035_v46, %v907_v44  ;;  %v1037_v51 = vpop.f32.mrb[1].mxu0 }
 0x1a8   :  { %v1659_v53 = vadd.f32 %v1037_v51, %v909_v45  ;;  %v1039_v54 = vpop.f32.mrb[2].mxu0  ;;  %v1388_v45 = vld [vmem:[%s2197_s1] sm:$0xff]  ;;  %v1389_v51 = vld [vmem:[%s2197_s1 + $0x8] sm:$0xff] }
 0x1a9   :  { %v1661_v55 = vadd.f32 %v1039_v54, %v911_v49  ;;  %v1041_v56 = vpop.f32.mrb[3].mxu0  ;;  %v1044_v58 = vmax.f32 %v1657_v50, 0.0 }
 0x1aa   :  { %v1663_v57 = vadd.f32 %v1041_v56, %v913_v52  ;;  %v1045_v60 = vmax.f32 %v1659_v53, 0.0 }
 0x1ab   :  { %v1046_v59 = vmax.f32 %v1661_v55, 0.0 }
 0x1ac   :  { %v1047_v61 = vmax.f32 %v1663_v57, 0.0 }
 0x1ad   :  { %v1048_v62 = vpack.c.bf16 %v1046_v59, %v1044_v58 }
 0x1ae   :  { %v1049_v63 = vpack.c.bf16 %v1047_v61, %v1045_v60 }
 0x1b0   :  { %1217 = vmatprep.mubr.bf16.mxu1 %v1049_v63 }
 0x1b1   :  { %1218 = vmatmul.mubr.bf16.vlgmr.msra.gmra.mrb[4].mxu1 %v1048_v62 }
 0x1b2   :  { %1338 = vmatpush1.bf16.msra.mxu1 %v1884_v0  ;;  %1369 = vmatprep.mubr.bf16.mxu1 %v1951_v13 }
 0x1b3   :  { %1339 = vmatprep.subr.bf16.mxu1 %v1889_v47 }
 0x1b6   :  { %1340 = vmatpush1.bf16.msra.mxu1 %v1887_v48 }
 0x1b7   :  { %1341 = vmatprep.subr.bf16.mxu1 %v1892_v1  ;;  %v1397_v1 = vmul.f32 -0.5, %v1388_v45 }
 0x1ba   :  { %1342 = vmatpush1.bf16.msra.mxu1 %v1890_v2 }
 0x1bb   :  { %1343 = vmatprep.subr.bf16.mxu1 %v1895_v3 }
 0x1be   :  { %1344 = vmatpush1.bf16.msra.mxu1 %v1893_v4  ;;  %v1398_v4 = vmul.f32 -0.5, %v1389_v51 }
 0x1bf   :  { %1345 = vmatprep.subr.bf16.mxu1 %v1898_v5 }
 0x1c0   :  { %v1400_v13 = vmul.f32 %v1398_v4, %v1389_v51 }
 0x1c2   :  { %1346 = vmatpush1.bf16.msra.mxu1 %v1896_v6  ;;  %v1399_v6 = vmul.f32 %v1397_v1, %v1388_v45 }
 0x1c3   :  { %1347 = vmatprep.subr.bf16.mxu1 %v1901_v7 }
 0x1c6   :  { %1348 = vmatpush1.bf16.msra.mxu1 %v1899_v8 }
 0x1c7   :  { %1349 = vmatprep.subr.bf16.mxu1 %v1904_v9 }
 0x1ca   :  { %1350 = vmatpush1.bf16.msra.mxu1 %v1902_v10 }
 0x1cb   :  { %1351 = vmatprep.subr.bf16.mxu1 %v1907_v11 }
 0x1ce   :  { %1352 = vmatpush1.bf16.msra.mxu1 %v1905_v12 }
 0x284   :  { %v1650_v14 = vpop.f32.mrb[4].mxu1 }
 0x285   :  { %v1651_v16 = vpop.f32.mrb[5].mxu1 }
 0x286   :  { %v1652_v17 = vadd.f32 %v1651_v16, %v1650_v14  ;;  %v1653_v18 = vpop.f32.mrb[6].mxu1 }
 0x287   :  { %v1654_v19 = vpop.f32.mrb[7].mxu1 }
 0x288   :  { %v1220_v20 = vadd.f32 %v1652_v17, %v1599_v15  ;;  %v1655_v21 = vadd.f32 %v1654_v19, %v1653_v18 }
 0x28a   :  { %v1223_v22 = vadd.f32 %v1655_v21, %v1599_v15  ;;  %v1226_v23 = vmax.f32 %v1220_v20, 0.0 }
 0x28c   :  { %v1227_v24 = vmax.f32 %v1223_v22, 0.0  ;;  %v1395_v22 = vand.u32 127, %v182_v37 }
 0x28e   :  { %v1228_v25 = vpack.c.bf16 %v1227_v24, %v1226_v23  ;;  %vm1396_vm2 = vcmp.lt.s32.totalorder %v1395_v22, 5  ;;  %vm1453_vm3 = vcmp.eq.s32.totalorder %v1395_v22, 5 }
 0x290   :  { %1370 = vmatmul.mubr.bf16.vlgmr.msra.gmra.mrb[8].mxu1 %v1228_v25 }
 0x363   :  { %v1371_v28 = vpop.f32.mrb[8].mxu1 }
 0x364   :  { %v1373_v29 = vpop.f32.mrb[9].mxu1  ;;  %v1372_v46 = vadd.f32 %v1371_v28, %v1250_v41 }
 0x365   :  { %v1374_v30 = vadd.f32 %v1373_v29, %v1254_v27  ;;  %v1375_v31 = vpop.f32.mrb[10].mxu1 }
 0x366   :  { %v1377_v32 = vpop.f32.mrb[11].mxu1  ;;  %v1376_v52 = vadd.f32 %v1375_v31, %v1250_v41 }
 0x367   :  { %v1380_v33 = vmax.f32 %v1374_v30, -20.0  ;;  %v1378_v34 = vadd.f32 %v1377_v32, %v1254_v27 }
 0x369   :  { %v2173_v35 = vmin.f32 %v1380_v33, 2.0  ;;  %v1381_v36 = vmax.f32 %v1378_v34, -20.0 }
 0x36b   :  { %v1384_v40 = vmul.f32 1.442695, %v2173_v35  ;;  %v2176_v42 = vmin.f32 %v1381_v36, 2.0  ;;  %v1401_v15 = vsub.f32 %v1399_v6, %v2173_v35 }
 0x36d   :  { %1908 = vpow2.f32 %v1384_v40  ;;  %v1386_v43 = vmul.f32 1.442695, %v2176_v42  ;;  %v1402_v24 = vsub.f32 %v1400_v13, %v2176_v42  ;;  %v1632_v28 = vadd.f32 -0.9189385, %v1401_v15 }
 0x36f   :  { %1910 = vpow2.f32 %v1386_v43  ;;  %v1633_v31 = vadd.f32 -0.9189385, %v1402_v24 }
 0x377   :  { %v1909_v44 = vpop.eup %1908 }
 0x378   :  { %v1390_v49 = vmul.f32 %v1909_v44, %v1388_v45 }
 0x379   :  { %v1911_v50 = vpop.eup %1910 }
 0x37a   :  { %v1391_v53 = vmul.f32 %v1911_v50, %v1389_v51  ;;  %v1392_v54 = vadd.f32 %v1390_v49, %v1372_v46 }
 0x37c   :  { %v1407_v55 = vmul.f32 -2.0, %v1392_v54  ;;  %v1393_v56 = vadd.f32 %v1391_v53, %v1376_v52  ;;  %v1405_v19 = vsub.f32 0.6931472, %v1392_v54 }
 0x37e   :  { %v1411_v57 = vand.u32 2147483647, %v1407_v55  ;;  %v1408_v38 = vmul.f32 -2.0, %v1393_v56  ;;  %v1409_v14 = vmax.f32 %v1407_v55, 0.0  ;;  %v1406_v26 = vsub.f32 0.6931472, %v1393_v56 }
 0x380   :  { %v1413_v39 = vsub.f32 0.0, %v1411_v57  ;;  %v1412_v58 = vand.u32 2147483647, %v1408_v38  ;;  %v1410_v21 = vmax.f32 %v1408_v38, 0.0 }
 0x382   :  { %v1415_v59 = vmul.f32 1.442695, %v1413_v39  ;;  %v1414_v60 = vsub.f32 0.0, %v1412_v58 }
 0x384   :  { %1912 = vpow2.f32 %v1415_v59  ;;  %v1417_v61 = vmul.f32 1.442695, %v1414_v60 }
 0x386   :  { %1914 = vpow2.f32 %v1417_v61 }
 0x38e   :  { %v1913_v62 = vpop.eup %1912 }
 0x38f   :  { %v1419_v63 = vadd.f32 1.0, %v1913_v62  ;;  %v1422_v48 = vmul.f32 -0.5, %v1913_v62  ;;  %v1425_v5 = vand.u32 2147483647, %v1913_v62 }
 0x390   :  { %v1915_v0 = vpop.eup %1914 }
 0x391   :  { %1916 = vlog2.f32 %v1419_v63  ;;  %v1428_v47 = vadd.f32 1.0, %v1915_v0  ;;  %v1431_v2 = vmul.f32 -0.5, %v1915_v0  ;;  %v1423_v3 = vadd.f32 1.0, %v1422_v48 }
 0x392   :  { %v1434_v9 = vand.u32 2147483647, %v1915_v0  ;;  %vm1426_vm0 = vcmp.lt.f32.partialorder %v1425_v5, 0.0004427343 }
 0x393   :  { %1918 = vlog2.f32 %v1428_v47  ;;  %v1432_v7 = vadd.f32 1.0, %v1431_v2  ;;  %v1424_v11 = vmul.f32 %v1913_v62, %v1423_v3 }
 0x394   :  { %vm1435_vm1 = vcmp.lt.f32.partialorder %v1434_v9, 0.0004427343  ;;  %1920 = vtanh.f32 %v1392_v54 }
 0x395   :  { %v1433_v18 = vmul.f32 %v1915_v0, %v1432_v7  ;;  %1922 = vtanh.f32 %v1393_v56 }
 0x39b   :  { %v1917_v8 = vpop.eup %1916 }
 0x39c   :  { %v1421_v10 = vmul.f32 0.6931472, %v1917_v8 }
 0x39d   :  { %v1919_v12 = vpop.eup %1918 }
 0x39e   :  { %v1427_v16 = vsel %vm1426_vm0, %v1424_v11, %v1421_v10  ;;  %v1430_v17 = vmul.f32 0.6931472, %v1919_v12  ;;  %v1921_v37 = vpop.eup %1920 }
 0x39f   :  { %v1437_v20 = vadd.f32 %v1427_v16, %v1409_v14  ;;  %v1923_v43 = vpop.eup %1922 }
 0x3a0   :  { %v1436_v23 = vsel %vm1435_vm1, %v1433_v18, %v1430_v17 }
 0x3a1   :  { %v1439_v25 = vsub.f32 %v1405_v19, %v1437_v20  ;;  %v1438_v27 = vadd.f32 %v1436_v23, %v1410_v21 }
 0x3a3   :  { %v1441_v29 = vmul.f32 2.0, %v1439_v25  ;;  %v1440_v30 = vsub.f32 %v1406_v26, %v1438_v27 }
 0x3a5   :  { %v1443_v32 = vsub.f32 %v1632_v28, %v1441_v29  ;;  %v1442_v33 = vmul.f32 2.0, %v1440_v30 }
 0x3a7   :  { %v1445_v34 = vsel %vm1396_vm2, %v1443_v32, 0.0  ;;  %v1444_v35 = vsub.f32 %v1633_v31, %v1442_v33 }
 0x3a8   :  { %1447 = vadd.xlane.f32.xlu0 %v1445_v34 }
 0x3a9   :  { %v1446_v36 = vsel %vm1396_vm2, %v1444_v35, 0.0 }
 0x3ac   :  { %1449 = vadd.xlane.f32.xlu0 %v1446_v36 }
 0x435   :  { %v1448_v40 = vpop.xlane.xlu0 %1447 }
 0x436   :  { %v1454_v42 = vsel %vm1453_vm3, %v1448_v40, %v1921_v37 }
 0x437   :  { %1456 = vst [vmem:[%s2204_s8] sm:$0xff] %v1454_v42 }
 0x439   :  { %v1450_v41 = vpop.xlane.xlu0 %1449 }
 0x43a   :  { %v1455_v44 = vsel %vm1453_vm3, %v1450_v41, %v1923_v43 }
 0x43b   :  { %1457 = vst [vmem:[%s2204_s8 + $0x8] sm:$0xff] %v1455_v44 }
 0x43c   :  { %1462 = vsyncpa [#allocation3], 1 }

</bundles_post_ra>
